<compile_context>
chip_gen: v7x
topology: tpu7x:2x2x1
jax: 0.10.0
libtpu: 0.0.40
codegen_flags: <defaults>
</compile_context>

<pallas_src>
import jax
import jax.numpy as jnp
from jax import lax
from jax.experimental import pallas as pl
from jax.experimental.pallas import tpu as pltpu

K_PROTO = 10
TAU = 0.5
EPS = 1e-12  # F.normalize eps
LANE = 128
SUBLANE = 8


def ot_head_kernel(z_ref, pns_ref, cs_ref, out_ref):
    # z_ref:   (tn, d_pad)  batch tile (lane-dense)
    # pns_ref: (K, d_pad)   prototypes, L2-normalized, pre-scaled by 1/TAU^2
    # cs_ref:  (1, K)       per-prototype column scale = clamp(||P||, eps) * TAU^2
    # out_ref: (tn, d_pad)
    z = z_ref[...]
    pns = pns_ref[...]

    # logits[i, k] = sum_d z[i, d] * pns[k, d]  (contract last dims; no transpose)
    logits = lax.dot_general(
        z, pns,
        dimension_numbers=(((1,), (1,)), ((), ())),
        preferred_element_type=jnp.float32,
    )

    # Row softmax over K (f32 math). Approx reciprocal runs on the EUP slot;
    # ~2^-12 relative error is negligible for a softmax denominator.
    m = jnp.max(logits, axis=1, keepdims=True)
    e = jnp.exp(logits - m)
    denom = jnp.sum(e, axis=1, keepdims=True)
    q = e * pl.reciprocal(denom, approx=True)

    # cent = Q @ P == (Q * colscale) @ pns   (because P = diag(colscale) @ pns)
    qs = (q * cs_ref[...]).astype(pns.dtype)
    cent = lax.dot_general(
        qs, pns,
        dimension_numbers=(((1,), (0,)), ((), ())),
        preferred_element_type=jnp.float32,
    )
    out_ref[...] = cent.astype(out_ref.dtype)


def _round_up(x, m):
    return ((x + m - 1) // m) * m


def _vmem_budget_bytes():
    """Per-generation scoped-VMEM cap, leaving headroom for compiler scratch."""
    try:
        cap = pltpu.get_tpu_info().vmem_capacity_bytes
    except Exception:
        return 48 << 20            # conservative: fits every generation
    if cap <= (64 << 20):          # v7x-class: 64 MiB per TensorCore
        return 48 << 20
    return 100 << 20               # v5e / v6e: 128 MiB physical


def _vmem_estimate(tn, d_pad, k, itemsize):
    """Live VMEM for one grid step: double-buffered tiles + f32 intermediates."""
    z_tile = tn * d_pad * itemsize
    out_tile = tn * d_pad * itemsize
    protos = k * d_pad * itemsize + _round_up(k, LANE) * 4   # pns + colscale
    # logits / e / q are lane-padded to 128 even when K < 128; cent acc is f32.
    inter = 3 * tn * LANE * 4 + tn * d_pad * 4
    return 2 * z_tile + 2 * out_tile + 2 * protos + inter


def _choose_tn(n, d_pad, k, itemsize, vmem_cap):
    """Batch-tile rows: sized in bytes (~2 MiB of z), multiple of 8, VMEM-safe."""
    row_bytes = d_pad * itemsize
    tn = max(SUBLANE, ((2 << 20) // row_bytes) // SUBLANE * SUBLANE)
    n8 = _round_up(n, SUBLANE)
    tn = min(tn, n8)
    # Keep >= 2 grid steps when the batch allows: steady-state pipeline and a
    # splittable "parallel" axis for v7x's two TensorCores.
    if n8 >= 2 * SUBLANE:
        half = _round_up(-(-n8 // 2), SUBLANE)
        tn = min(tn, half)
    # Shrink until double-buffered tiles + intermediates fit the VMEM budget.
    while tn > SUBLANE and _vmem_estimate(tn, d_pad, k, itemsize) > vmem_cap:
        tn = max(SUBLANE, (tn // 2) // SUBLANE * SUBLANE)
    return tn


def ot_head(z, P, *, tau=TAU, tn=None):
    """z: (N, d_tsk), P: (K, d_tsk) -> cent: (N, d_tsk). Matches OTHead.forward."""
    n, d = z.shape
    k, d_p = P.shape
    assert d == d_p

    # ---- One-time prototype prep (plain JAX, outside the grid loop) ----
    p32 = P.astype(jnp.float32)
    norm = jnp.maximum(jnp.sqrt(jnp.sum(p32 * p32, axis=1, keepdims=True)), EPS)
    pns = (p32 / norm) * (1.0 / (tau * tau))                 # Pn / TAU^2
    colscale = (norm * (tau * tau)).reshape(1, k).astype(jnp.float32)  # pns*cs == P
    pns = pns.astype(z.dtype)                                # MXU in activation dtype

    # ---- Lane-dense feature dim + row-padded batch ----
    itemsize = jnp.dtype(z.dtype).itemsize
    d_pad = _round_up(d, LANE)
    vmem_cap = _vmem_budget_bytes()
    if tn is None:
        tn = _choose_tn(n, d_pad, k, itemsize, vmem_cap)
    n_pad = _round_up(n, tn)
    grid = (n_pad // tn,)

    z_pad = jnp.pad(z, ((0, n_pad - n), (0, d_pad - d)))
    pns_pad = jnp.pad(pns, ((0, 0), (0, d_pad - d)))
    # NOTE: padding is along d only (zero columns are inert) and along N (rows
    # sliced off). K is NOT padded: zero-padded prototypes would contribute
    # exp(0 - m) to the softmax denominator and corrupt Q.

    cost = pl.CostEstimate(
        flops=4 * n * k * d,
        transcendentals=n * k,
        bytes_accessed=(2 * n * d + k * d) * itemsize + k * 4,
    )

    out = pl.pallas_call(
        ot_head_kernel,
        out_shape=jax.ShapeDtypeStruct((n_pad, d_pad), z.dtype),
        grid_spec=pltpu.PrefetchScalarGridSpec(
            num_scalar_prefetch=0,
            grid=grid,
            in_specs=[
                pl.BlockSpec((tn, d_pad), lambda i: (i, 0)),  # z tile over batch
                pl.BlockSpec((k, d_pad), lambda i: (0, 0)),   # scaled protos (resident)
                pl.BlockSpec((1, k), lambda i: (0, 0)),       # column scales (resident)
            ],
            out_specs=pl.BlockSpec((tn, d_pad), lambda i: (i, 0)),
        ),
        compiler_params=pltpu.CompilerParams(
            dimension_semantics=("parallel",),
            vmem_limit_bytes=vmem_cap,
        ),
        cost_estimate=cost,
    )(z_pad, pns_pad, colscale)

    return out[:n, :d]


def ot_head_ref(z, P, tau=TAU):
    """Pure-JAX reference mirroring the PyTorch module exactly."""
    norm = jnp.sqrt(jnp.sum(P * P, axis=1, keepdims=True))
    Pn = P / jnp.maximum(norm, EPS)
    scr = z @ Pn.T / tau
    Q = jax.nn.softmax(scr / tau, axis=1)
    return Q @ P


if __name__ == "__main__":
    k = K_PROTO
    d_tsk = 32
    n = 8

    key = jax.random.PRNGKey(0)
    k_p, k_z = jax.random.split(key)
    P = jax.random.normal(k_p, (k, d_tsk), dtype=jnp.float32)
    z = jax.random.normal(k_z, (n, d_tsk), dtype=jnp.float32)

    out = ot_head(z, P)
    out = jax.block_until_ready(out)

    ref = ot_head_ref(z, P)
    assert out.shape == (n, d_tsk)
    # Tolerance allows the approx (EUP) softmax reciprocal.
    assert jnp.allclose(out, ref, atol=2e-3, rtol=2e-3), "mismatch vs reference"

    print("KERNEL_OK")
</pallas_src>

<mosaic_0001>
module attributes {stable_mosaic.version = 11 : i64} {
  func.func @ot_head_kernel(%arg0: i32, %arg1: memref<8x128xf32, #tpu.memory_space<vmem>>, %arg2: memref<10x128xf32, #tpu.memory_space<vmem>>, %arg3: memref<1x10xf32, #tpu.memory_space<vmem>>, %arg4: memref<8x128xf32, #tpu.memory_space<vmem>>) attributes {dimension_semantics = [#tpu.dimension_semantics<parallel>], iteration_bounds = array<i64: 1>, scalar_prefetch = 0 : i64, scratch_operands = 0 : i64, tpu.core_type = #tpu.core_type<tc>, window_params = [{transform_indices = @transform_0, window_bounds = array<i64: 8, 128>}, {pipeline_mode = #tpu.pipeline_mode<synchronous>, transform_indices = @transform_1, window_bounds = array<i64: 10, 128>}, {pipeline_mode = #tpu.pipeline_mode<synchronous>, transform_indices = @transform_2, window_bounds = array<i64: 1, 10>}, {transform_indices = @transform_3, window_bounds = array<i64: 8, 128>}]} {
    %c0 = arith.constant 0 : index
    %c0_0 = arith.constant 0 : index
    %0 = vector.load %arg1[%c0, %c0_0] : memref<8x128xf32, #tpu.memory_space<vmem>>, vector<8x128xf32>
    %c0_1 = arith.constant 0 : index
    %c0_2 = arith.constant 0 : index
    %1 = vector.load %arg2[%c0_1, %c0_2] : memref<10x128xf32, #tpu.memory_space<vmem>>, vector<10x128xf32>
    %cst = arith.constant dense<0.000000e+00> : vector<8x10xf32>
    %2 = tpu.matmul %0, %1, %cst {dimension_numbers = #tpu.dot_dimension_numbers<[1], [1], [0], [0], [0, 0, 1, 0], [], []>} : vector<8x128xf32>, vector<10x128xf32>, vector<8x10xf32> -> vector<8x10xf32>
    %cst_3 = arith.constant dense<0xFF800000> : vector<8xf32>
    %3 = vector.multi_reduction <maximumf>, %2, %cst_3 [1] : vector<8x10xf32> to vector<8xf32>
    %4 = vector.shape_cast %3 : vector<8xf32> to vector<8x1xf32>
    %5 = vector.broadcast %4 : vector<8x1xf32> to vector<8x10xf32>
    %6 = arith.subf %2, %5 : vector<8x10xf32>
    %7 = math.exp %6 : vector<8x10xf32>
    %cst_4 = arith.constant dense<0.000000e+00> : vector<8xf32>
    %8 = vector.multi_reduction <add>, %7, %cst_4 [1] : vector<8x10xf32> to vector<8xf32>
    %9 = vector.shape_cast %8 : vector<8xf32> to vector<8x1xf32>
    %10 = tpu.reciprocal %9 {approx = true} : vector<8x1xf32> -> vector<8x1xf32>
    %11 = vector.broadcast %10 : vector<8x1xf32> to vector<8x10xf32>
    %12 = arith.mulf %7, %11 : vector<8x10xf32>
    %c0_5 = arith.constant 0 : index
    %c0_6 = arith.constant 0 : index
    %13 = vector.load %arg3[%c0_5, %c0_6] : memref<1x10xf32, #tpu.memory_space<vmem>>, vector<1x10xf32>
    %14 = vector.broadcast %13 : vector<1x10xf32> to vector<8x10xf32>
    %15 = arith.mulf %12, %14 : vector<8x10xf32>
    %cst_7 = arith.constant dense<0.000000e+00> : vector<8x128xf32>
    %16 = tpu.matmul %15, %1, %cst_7 {dimension_numbers = #tpu.dot_dimension_numbers<[1], [0], [0], [1], [0, 0, 1, 1], [], []>} : vector<8x10xf32>, vector<10x128xf32>, vector<8x128xf32> -> vector<8x128xf32>
    %c0_8 = arith.constant 0 : index
    %c0_9 = arith.constant 0 : index
    %17 = vector.load %arg4[%c0_8, %c0_9] : memref<8x128xf32, #tpu.memory_space<vmem>>, vector<8x128xf32>
    tpu.vector_store %arg4[%c0_8, %c0_9], %16 {strides = array<i32>} : memref<8x128xf32, #tpu.memory_space<vmem>>, vector<8x128xf32>,
    return
  }
  func.func @transform_0(%arg0: i32) -> (i32, i32) {
    %c0_i32 = arith.constant 0 : i32
    %c0_i32_0 = arith.constant 0 : i32
    return %arg0, %c0_i32 : i32, i32
  }
  func.func @transform_1(%arg0: i32) -> (i32, i32) {
    %c0_i32 = arith.constant 0 : i32
    %c0_i32_0 = arith.constant 0 : i32
    %c0_i32_1 = arith.constant 0 : i32
    return %c0_i32, %c0_i32_0 : i32, i32
  }
  func.func @transform_2(%arg0: i32) -> (i32, i32) {
    %c0_i32 = arith.constant 0 : i32
    %c0_i32_0 = arith.constant 0 : i32
    %c0_i32_1 = arith.constant 0 : i32
    return %c0_i32, %c0_i32_0 : i32, i32
  }
  func.func @transform_3(%arg0: i32) -> (i32, i32) {
    %c0_i32 = arith.constant 0 : i32
    %c0_i32_0 = arith.constant 0 : i32
    return %arg0, %c0_i32 : i32, i32
  }
}

</mosaic_0001>

<bundles_post_ra>
// kernel: tpu_custom_call.1
= control target key start
LH: loop header
LB: loop body
LE: loop exit
PB: predicated region body
PF: predicated region fallthrough
CT: control target
= control target key end

     0   :  { %8 = vsyncpa [#allocation3], 0  ;;  %s421_s0 = inlined_call_operand.hbm [shape: f32[8,128], index: 0, kind: input, shape index: {}]   ;;  %s422_s1 = inlined_call_operand.hbm [shape: f32[10,128], index: 1, kind: input, shape index: {}]   ;;  %s423_s2 = inlined_call_operand.vmem [shape: f32[1,10], index: 2, kind: input, shape index: {}]   ;;  %s424_s3 = inlined_call_operand.hbm [shape: f32[8,128], index: 3, kind: output, shape index: {}]  }
   0x1   :  { %9 = vsyncpa [#allocation6], 0 }
   0x2   :  { %10 = vsyncpa [#allocation4], 0  ;;  %s343_s12 = smov [#allocation2]   ;;  %s344_s14 = smov [#allocation5]  }
   0x3   :  { %s17_s13 = sshll.u32 %s343_s12, 4  ;;  %s26_s15 = sshll.u32 %s344_s14, 4  ;;  %s18_s13 = int_to_ptr.vmem [resolvable:$true] %s17_s13  ;;  %s372_s15 = int_to_ptr.vmem [resolvable:$true] %s26_s15 }
   0x4   :  { %s271_s18 = scalar_lea.hbm %s421_s0, 128 }
   0x5   :  { %p272_p0 = scmp.ne.s32.totalorder %s421_s0, %s271_s18  ;;  %p275_p1 = scmp.lt.u32.totalorder %s271_s18, %s421_s0 }
   0x7   :  { %p277_p2 = pnand %p275_p1, %p272_p0 }
   0x9   :  { %280 = shalt.err (!%p277_p2)
}
   0xa   :  { %s281_s23 = scalar_lea.vmem %s18_s13, 128  ;;  %p286_p4 = scmp.lt.s32.totalorder %s18_s13, %s18_s13 }
   0xb   :  { %p282_p3 = scmp.ne.s32.totalorder %s18_s13, %s281_s23  ;;  %p287_p5 = scmp.lt.s32.totalorder %s281_s23, %s281_s23 }
   0xd   :  { %p288_p6 = por %p287_p5, %p286_p4 }
   0xf   :  { %p289_p7 = pnand %p288_p6, %p282_p3 }
  0x11   :  { %292 = shalt.err (!%p289_p7)
}
  0x12   :  { %20 = dma.hbm_to_vmem [thread:$0]  %s421_s0, 128, %s18_s13, [#allocation3]  }
  0x13   :  { %s293_s28 = scalar_lea.hbm %s422_s1, 256 }
  0x14   :  { %p294_p8 = scmp.ne.s32.totalorder %s422_s1, %s293_s28  ;;  %p297_p9 = scmp.lt.u32.totalorder %s293_s28, %s422_s1 }
  0x16   :  { %p299_p10 = pnand %p297_p9, %p294_p8 }
  0x18   :  { %302 = shalt.err (!%p299_p10)
}
  0x19   :  { %s303_s6 = scalar_lea.vmem %s372_s15, 256  ;;  %p308_p12 = scmp.lt.s32.totalorder %s372_s15, %s372_s15 }
  0x1a   :  { %p304_p11 = scmp.ne.s32.totalorder %s372_s15, %s303_s6  ;;  %p309_p13 = scmp.lt.s32.totalorder %s303_s6, %s303_s6 }
  0x1c   :  { %p310_p0 = por %p309_p13, %p308_p12 }
  0x1e   :  { %p311_p1 = pnand %p310_p0, %p304_p11 }
  0x20   :  { %314 = shalt.err (!%p311_p1)
}
  0x21   :  { %s345_s0 = smov 128   ;;  %s346_s7 = smov 8  }
  0x22   :  { %32 = dma.hbm_to_vmem [thread:$0]  %s422_s1, 256, %s372_s15, [#allocation6], %s345_s0, %s345_s0, %s346_s7  }
  0x23   :  { %337 = dma.done.wait [#allocation3], 128  }
  0x24   :  { %338 = vsyncadd [#allocation3], 4294967168 }
  0x25   :  { %339 = dma.done.wait [#allocation6], 256  }
  0x26   :  { %340 = vsyncadd [#allocation6], 4294967040  ;;  %v347_v0 = vmov 0.0|0.0   ;;  %vm348_vm0 = vmmov 0   ;;  %v349_v1 = vmov 0.0   ;;  %v42_v2 = vld [vmem:[#allocation5] sm:$0xff] }
  0x27   :  { %251 = vmatprep.subr.bf16.mxu0 %v347_v0  ;;  %241 = vmatprep.mubr.msk.f32.mxu0 %vm348_vm0, %v349_v1  ;;  %v43_v3 = vld [vmem:[#allocation5 + $0x8] sm:$0x3]  ;;  %v41_v5 = vld [vmem:[#allocation2] sm:$0xff]  ;;  %vm114_vm1 = vcmask 80896   ;;  %vm137_vm2 = vcmask 1041408   ;;  %vm350_vm3 = vmmov 1  }
  0x28   :  { %254 = vmatprep.subr.bf16.mxu1 %v347_v0  ;;  %248 = vmatprep.mubr.msk.f32.mxu1 %vm348_vm0, %v349_v1  ;;  %v252_v4 = vpack.c.bf16 %v43_v3, %v42_v2  ;;  %vm256_vm4 = vmpackc.low %vm137_vm2, %vm350_vm3  ;;  %v228_v16 = vld [vmem:[%s423_s2] ss:$0 sm:$0xff]  ;;  %s351_s11 = smov [#allocation7]  }
  0x29   :  { %s218_s12 = sshll.u32 %s351_s11, 4  ;;  %s219_s12 = int_to_ptr.vmem [resolvable:$true] %s218_s12 }
  0x2a   :  { %253 = vmatpush3.bf16.xpose.msra.mxu0 %v252_v4  ;;  %257 = vmatpush3.bf16.msk.msra.mxu1 %vm256_vm4, %v252_v4  ;;  %s315_s13 = scalar_lea.vmem %s219_s12, 128  ;;  %p320_p3 = scmp.lt.s32.totalorder %s219_s12, %s219_s12 }
  0x2b   :  { %p316_p2 = scmp.ne.s32.totalorder %s219_s12, %s315_s13  ;;  %p321_p4 = scmp.lt.s32.totalorder %s315_s13, %s315_s13 }
  0x2d   :  { %p322_p5 = por %p321_p4, %p320_p3 }
  0x2f   :  { %p323_p6 = pnand %p322_p5, %p316_p2 }
  0x31   :  { %242 = vmatmul.mubr.f32.vlgmr.msra.gmra.mrb[0].mxu0 %v41_v5 }
 0x104   :  { %v110_v6 = vpop.f32.mrb[0].mxu0 }
 0x105   :  { %v243_v7 = vpop.f32.mrb[1].mxu0  ;;  %v115_v8 = vsel %vm114_vm1, %v110_v6, -inf }
 0x106   :  { %116 = vmax.xlane.f32.xlu0 %v115_v8 }
 0x193   :  { %v117_v9 = vpop.xlane.xlu0 %116 }
 0x194   :  { %v118_v10 = vsub.f32 %v110_v6, %v117_v9 }
 0x196   :  { %v119_v11 = vmul.f32 1.442695, %v118_v10 }
 0x198   :  { %267 = vpow2.f32 %v119_v11 }
 0x1a2   :  { %v268_v12 = vpop.eup %267 }
 0x1a3   :  { %v121_v13 = vsel %vm114_vm1, %v268_v12, 0.0 }
 0x1a4   :  { %122 = vadd.xlane.f32.xlu0 %v121_v13 }
 0x231   :  { %v123_v14 = vpop.xlane.xlu0 %122 }
 0x232   :  { %269 = vrcp.f32 %v123_v14 }
 0x23c   :  { %v270_v15 = vpop.eup %269 }
 0x23d   :  { %v125_v17 = vmul.f32 %v270_v15, %v268_v12 }
 0x23f   :  { %v133_v18 = vmul.f32 %v228_v16, %v125_v17 }
 0x241   :  { %249 = vmatmul.mubr.msk.f32.vlgmr.msra.gmra.mrb[0].mxu1 %vm114_vm1, %v133_v18 }
 0x314   :  { %v207_v19 = vpop.f32.mrb[0].mxu1 }
 0x315   :  { %211 = vst [vmem:[#allocation7] sm:$0xff] %v207_v19  ;;  %v250_v20 = vpop.f32.mrb[1].mxu1 }
 0x316   :  { %326 = shalt.err (!%p323_p6)
}
 0x317   :  { %s327_s2 = scalar_lea.hbm %s424_s3, 128 }
 0x318   :  { %p328_p7 = scmp.ne.s32.totalorder %s424_s3, %s327_s2  ;;  %p331_p8 = scmp.lt.u32.totalorder %s327_s2, %s424_s3 }
 0x31a   :  { %p333_p9 = pnand %p331_p8, %p328_p7 }
 0x31c   :  { %336 = shalt.err (!%p333_p9)
}
 0x31d   :  { %221 = dma.vmem_to_hbm [thread:$0]  %s219_s12, 128, %s424_s3, [#allocation4]  }
 0x31e   :  { %341 = dma.done.wait [#allocation4], 128  }
 0x31f   :  { %342 = vsyncadd [#allocation4], 4294967168 }
 0x320   :  { %225 = vsyncpa [#allocation3], 1 }
 0x321   :  { %226 = vsyncpa [#allocation6], 1 }
 0x322   :  { %227 = vsyncpa [#allocation4], 1 }

</bundles_post_ra>
